<compile_context>
chip_gen: v5e
topology: v5e:2x2
jax: 0.10.0
libtpu: 0.0.40
codegen_flags: <defaults>
</compile_context>

<pallas_src>
import jax
import jax.numpy as jnp
from jax import lax
from jax.experimental import pallas as pl
from jax.experimental.pallas import tpu as pltpu


def linear_tanh_kernel(x_ref, w_ref, b_ref, o_ref):
    # x: [tb, in_dim]   w: [out_dim, in_dim] (PyTorch layout)   b: [1, out_dim]
    x = x_ref[...]
    w = w_ref[...]
    b = b_ref[...]
    # Contract x's dim 1 against w's dim 1  ==  x @ w.T, on the MXU, f32 accumulation,
    # with no separate transpose op.
    y = lax.dot_general(
        x, w,
        dimension_numbers=(((1,), (1,)), ((), ())),
        preferred_element_type=jnp.float32,
    )
    # Fused bias + tanh; tanh goes to the EUP (separate bundle slot from MXU/VPU).
    o_ref[...] = jnp.tanh(y + b).astype(o_ref.dtype)


def _round_up(n, m):
    return ((n + m - 1) // m) * m


def linear_regression_sg_forward(x, weight, bias, *, batch_tile=2048):
    """Forward of LinearRegressionSG (linear + tanh) as a Pallas TPU kernel.

    x:      [B, in_dim]        float32
    weight: [out_dim, in_dim]  (PyTorch nn.Linear convention, used as-is)
    bias:   [out_dim]
    returns [B, out_dim]       float32
    """
    B, in_dim = x.shape
    out_dim = weight.shape[0]

    # Batch tile: multiple of 8 sublanes, capped at `batch_tile`, and capped at
    # ceil(B/2) (rounded up to 8) so the grid has >= 2 steps whenever B > 8
    # (lets the "parallel" batch axis use both TensorCores on v7x).
    half_b = _round_up(max(1, (B + 1) // 2), 8)
    tb = max(8, min(_round_up(batch_tile, 8), half_b))
    b_pad = _round_up(B, tb)

    # Only the small batch remainder (< tb rows) is zero-padded; no lane padding.
    x_p = x if b_pad == B else jnp.pad(x, ((0, b_pad - B), (0, 0)))
    bias_2d = bias.reshape(1, out_dim)

    grid = (b_pad // tb,)

    # Advisory cost from logical (unpadded) dims.
    cost = pl.CostEstimate(
        flops=2 * B * in_dim * out_dim,
        transcendentals=B * out_dim,
        bytes_accessed=4 * (B * in_dim + out_dim * in_dim + out_dim + B * out_dim),
    )

    # VMEM budget: double-buffered x/out tiles + (double-buffered) resident weight/bias.
    vmem_needed = 2 * (tb * in_dim + tb * out_dim) * 4 + 2 * (out_dim * in_dim + out_dim) * 4
    vmem_limit = None
    if vmem_needed * 2 > (16 << 20):  # exceed v5e's 16 MiB default scoped VMEM
        vmem_limit = min(vmem_needed * 2, 64 << 20)

    out_padded = pl.pallas_call(
        linear_tanh_kernel,
        out_shape=jax.ShapeDtypeStruct((b_pad, out_dim), x.dtype),
        grid=grid,
        in_specs=[
            # x: stream over batch; full logical in_dim (no lane padding).
            pl.BlockSpec((tb, in_dim), lambda i: (i, 0)),
            # weight / bias: VMEM-resident (constant block index).
            pl.BlockSpec((out_dim, in_dim), lambda i: (0, 0)),
            pl.BlockSpec((1, out_dim), lambda i: (0, 0)),
        ],
        out_specs=pl.BlockSpec((tb, out_dim), lambda i: (i, 0)),
        compiler_params=pltpu.CompilerParams(
            dimension_semantics=("parallel",),   # shard batch across TCs on v7x
            vmem_limit_bytes=vmem_limit,
        ),
        cost_estimate=cost,
    )(x_p, weight, bias_2d)

    # Slice away any batch-remainder padding.
    return out_padded if b_pad == B else out_padded[:B]


# TODO(synk): conv=True branch (Conv2d(n_filters+10, n_filters, 3, padding=1)) not
# implemented; the default constructor path (conv=False, Linear+tanh) is what's kernelized.

if __name__ == "__main__":
    # Module config: num_features=32, in_channels=1 -> in_dim = 33, out_dim = 32
    num_features = 32
    in_channels = 1
    in_dim = num_features * in_channels + 1
    out_dim = num_features * in_channels
    batch = 8

    key = jax.random.PRNGKey(0)
    kx, kw, kb = jax.random.split(key, 3)

    # Deterministic parameter init (PyTorch-style uniform(-1/sqrt(in), 1/sqrt(in)))
    bound = 1.0 / jnp.sqrt(jnp.float32(in_dim))
    weight = jax.random.uniform(kw, (out_dim, in_dim), jnp.float32, -bound, bound)
    bias = jax.random.uniform(kb, (out_dim,), jnp.float32, -bound, bound)
    x = jax.random.normal(kx, (batch, in_dim), jnp.float32)

    out = linear_regression_sg_forward(x, weight, bias)
    out = jax.block_until_ready(out)

    # Reference check (plain JAX) to confirm semantics.
    ref = jnp.tanh(x @ weight.T + bias)
    assert out.shape == (batch, out_dim)
    assert jnp.allclose(out, ref, atol=1e-5, rtol=1e-5)

    print("KERNEL_OK")
</pallas_src>

<mosaic_0001>
module attributes {stable_mosaic.version = 11 : i64} {
  func.func @linear_tanh_kernel(%arg0: i32, %arg1: memref<8x33xf32, #tpu.memory_space<vmem>>, %arg2: memref<32x33xf32, #tpu.memory_space<vmem>>, %arg3: memref<1x32xf32, #tpu.memory_space<vmem>>, %arg4: memref<8x32xf32, #tpu.memory_space<vmem>>) attributes {dimension_semantics = [#tpu.dimension_semantics<parallel>], iteration_bounds = array<i64: 1>, scalar_prefetch = 0 : i64, scratch_operands = 0 : i64, tpu.core_type = #tpu.core_type<tc>, window_params = [{transform_indices = @transform_0, window_bounds = array<i64: 8, 33>}, {pipeline_mode = #tpu.pipeline_mode<synchronous>, transform_indices = @transform_1, window_bounds = array<i64: 32, 33>}, {pipeline_mode = #tpu.pipeline_mode<synchronous>, transform_indices = @transform_2, window_bounds = array<i64: 1, 32>}, {transform_indices = @transform_3, window_bounds = array<i64: 8, 32>}]} {
    %c0 = arith.constant 0 : index
    %c0_0 = arith.constant 0 : index
    %0 = vector.load %arg1[%c0, %c0_0] : memref<8x33xf32, #tpu.memory_space<vmem>>, vector<8x33xf32>
    %c0_1 = arith.constant 0 : index
    %c0_2 = arith.constant 0 : index
    %1 = vector.load %arg2[%c0_1, %c0_2] : memref<32x33xf32, #tpu.memory_space<vmem>>, vector<32x33xf32>
    %c0_3 = arith.constant 0 : index
    %c0_4 = arith.constant 0 : index
    %2 = vector.load %arg3[%c0_3, %c0_4] : memref<1x32xf32, #tpu.memory_space<vmem>>, vector<1x32xf32>
    %cst = arith.constant dense<0.000000e+00> : vector<8x32xf32>
    %3 = tpu.matmul %0, %1, %cst {dimension_numbers = #tpu.dot_dimension_numbers<[1], [1], [0], [0], [0, 0, 1, 0], [], []>} : vector<8x33xf32>, vector<32x33xf32>, vector<8x32xf32> -> vector<8x32xf32>
    %4 = vector.broadcast %2 : vector<1x32xf32> to vector<8x32xf32>
    %5 = arith.addf %3, %4 : vector<8x32xf32>
    %6 = math.tanh %5 : vector<8x32xf32>
    %c0_5 = arith.constant 0 : index
    %c0_6 = arith.constant 0 : index
    %7 = vector.load %arg4[%c0_5, %c0_6] : memref<8x32xf32, #tpu.memory_space<vmem>>, vector<8x32xf32>
    tpu.vector_store %arg4[%c0_5, %c0_6], %6 {strides = array<i32>} : memref<8x32xf32, #tpu.memory_space<vmem>>, vector<8x32xf32>,
    return
  }
  func.func @transform_0(%arg0: i32) -> (i32, i32) {
    %c0_i32 = arith.constant 0 : i32
    %c0_i32_0 = arith.constant 0 : i32
    return %arg0, %c0_i32 : i32, i32
  }
  func.func @transform_1(%arg0: i32) -> (i32, i32) {
    %c0_i32 = arith.constant 0 : i32
    %c0_i32_0 = arith.constant 0 : i32
    %c0_i32_1 = arith.constant 0 : i32
    return %c0_i32, %c0_i32_0 : i32, i32
  }
  func.func @transform_2(%arg0: i32) -> (i32, i32) {
    %c0_i32 = arith.constant 0 : i32
    %c0_i32_0 = arith.constant 0 : i32
    %c0_i32_1 = arith.constant 0 : i32
    return %c0_i32, %c0_i32_0 : i32, i32
  }
  func.func @transform_3(%arg0: i32) -> (i32, i32) {
    %c0_i32 = arith.constant 0 : i32
    %c0_i32_0 = arith.constant 0 : i32
    return %arg0, %c0_i32 : i32, i32
  }
}

</mosaic_0001>

<bundles_post_ra>
// kernel: tpu_custom_call.1
= control target key start
LH: loop header
LB: loop body
LE: loop exit
PB: predicated region body
PF: predicated region fallthrough
CT: control target
= control target key end

     0   :  { %8 = vsyncpa [#allocation3], 0  ;;  %s239_s0 = inlined_call_operand.hbm [shape: f32[8,33], index: 0, kind: input, shape index: {}]   ;;  %s240_s1 = inlined_call_operand.hbm [shape: f32[32,33], index: 1, kind: input, shape index: {}]   ;;  %s241_s2 = inlined_call_operand.vmem [shape: f32[1,32], index: 2, kind: input, shape index: {}]   ;;  %s242_s3 = inlined_call_operand.hbm [shape: f32[8,32], index: 3, kind: output, shape index: {}]  }
   0x1   :  { %9 = vsyncpa [#allocation6], 0 }
   0x2   :  { %10 = vsyncpa [#allocation4], 0  ;;  %s16_s14 = sshll.u32 %s239_s0, 4  ;;  %s202_s15 = smov [#allocation2]   ;;  %s17_s14 = int_to_ptr.hbm [resolvable:$true] %s16_s14 }
   0x3   :  { %s18_s16 = sshll.u32 %s202_s15, 4  ;;  %s26_s19 = sshll.u32 %s240_s1, 4  ;;  %s19_s16 = int_to_ptr.vmem [resolvable:$true] %s18_s16  ;;  %s27_s19 = int_to_ptr.hbm [resolvable:$true] %s26_s19 }
   0x4   :  { %21 = dma.hbm_to_vmem [thread:$0]  %s17_s14, 128, %s19_s16, [#allocation3]  }
   0x5   :  { %s203_s20 = smov [#allocation5]   ;;  %s204_s22 = smov 128  }
   0x6   :  { %s28_s21 = sshll.u32 %s203_s20, 4  ;;  %s205_s23 = smov 8   ;;  %s29_s21 = int_to_ptr.vmem [resolvable:$true] %s28_s21 }
   0x7   :  { %34 = dma.hbm_to_vmem [thread:$0]  %s27_s19, 512, %s29_s21, [#allocation6], %s204_s22, %s204_s22, %s205_s23  }
   0x8   :  { %196 = dma.done.wait [#allocation3], 128  }
   0x9   :  { %197 = vsyncadd [#allocation3], 4294967168 }
   0xa   :  { %198 = dma.done.wait [#allocation6], 512  }
   0xb   :  { %199 = vsyncadd [#allocation6], 4294966784  ;;  %vm54_vm0 = vcmask 269312   ;;  %v49_v0 = vld [vmem:[#allocation5 + $0x18] sm:$0xff]  ;;  %v48_v1 = vld [vmem:[#allocation5 + $0x10] sm:$0xff]  ;;  %s206_s24 = smov [#allocation7]  }
   0xc   :  { %111 = vmatpush.xpose.msk.msra.mxu0 %vm54_vm0, %v49_v0  ;;  %v47_v2 = vld [vmem:[#allocation5 + $0x8] sm:$0xff]  ;;  %v46_v3 = vld [vmem:[#allocation5] sm:$0xff]  ;;  %v45_v4 = vld [vmem:[#allocation2] sm:$0xff]  ;;  %s98_s25 = sshll.u32 %s206_s24, 4  ;;  %s100_s28 = sshll.u32 %s242_s3, 4  ;;  %vm91_vm1 = vcmask 261120   ;;  %s99_s25 = int_to_ptr.vmem [resolvable:$true] %s98_s25  ;;  %s101_s28 = int_to_ptr.hbm [resolvable:$true] %s100_s28 }
   0xd   :  { %v121_v5 = vld [vmem:[%s241_s2] ss:$0 sm:$0xff] }
  0x10   :  { %112 = vmatpush.xpose.msk.msra.mxu0 %vm54_vm0, %v48_v1 }
  0x14   :  { %113 = vmatpush.xpose.msk.msra.mxu0 %vm54_vm0, %v47_v2 }
  0x18   :  { %114 = vmatpush.xpose.msk.msra.mxu0 %vm54_vm0, %v46_v3 }
  0x1b   :  { %115 = vmatmul.msk.f32.vlgmr.msra.gmra.mxu0 %vm54_vm0, %v45_v4 }
  0x98   :  { %v87_v6 = vpop.f32.mrf.mxu0 }
  0x99   :  { %v88_v7 = vadd.f32 %v121_v5, %v87_v6 }
  0x9b   :  { %122 = vtanh.f32 %v88_v7 }
  0xa1   :  { %v123_v8 = vpop.eup %122 }
  0xa2   :  { %92 = vst.msk [vmem:[#allocation7] sm:$0xff] %vm91_vm1, %v123_v8 }
  0xa3   :  { %103 = dma.vmem_to_hbm [thread:$0]  %s99_s25, 128, %s101_s28, [#allocation4]  }
  0xa4   :  { %200 = dma.done.wait [#allocation4], 128  }
  0xa5   :  { %201 = vsyncadd [#allocation4], 4294967168 }
  0xa6   :  { %108 = vsyncpa [#allocation3], 1 }
  0xa7   :  { %109 = vsyncpa [#allocation6], 1 }
  0xa8   :  { %110 = vsyncpa [#allocation4], 1 }

</bundles_post_ra>
